<compile_context>
chip_gen: v6e
topology: v6e:2x2x1
jax: 0.10.0
libtpu: 0.0.40
codegen_flags: <defaults>
</compile_context>

<pallas_src>
import math

import jax
import jax.numpy as jnp
from jax import lax
from jax.experimental import pallas as pl
from jax.experimental.pallas import tpu as pltpu

ACTOR_INPUTS = 4
HIDDEN_DIM_1 = 128
CHUNK_B = 256  # lanes per inner chunk: hidden chunk [128, 256] f32 = 32 vregs


def _round_up(n, m):
    return ((n + m - 1) // m) * m


def _cdiv(a, b):
    return (a + b - 1) // b


def _value_net_kernel(xt_ref, w1_ref, b1_ref, w2_ref, b2_ref, o_ref):
    """One grid step: [4, TILE_B] inputs -> [1, TILE_B] values, chunked by lanes.

    xt_ref: [4, TILE_B] f32  (batch on lanes)
    w1_ref: [128, 4]         (PyTorch hidden.weight, used as-is)
    b1_ref: [128, 1]
    w2_ref: [1, 128]         (PyTorch output.weight, used as-is)
    b2_ref: [1, 1] f32 in SMEM
    o_ref : [1, TILE_B] f32  (lane-dense output slab)
    """
    tile_b = o_ref.shape[-1]
    n_chunks = tile_b // CHUNK_B

    # Hoisted once per grid step (tiny): the [1,128] output row and the scalar
    # bias.  w1/b1 are intentionally NOT hoisted — re-loading them per chunk is
    # a handful of cheap vld and keeps the loop's live vreg set small.
    w2 = w2_ref[...]          # [1, 128] — a single vreg
    b2 = b2_ref[0, 0]         # SMEM scalar

    def chunk(c, carry):
        start = pl.multiple_of(c * CHUNK_B, CHUNK_B)
        xc = xt_ref[:, pl.ds(start, CHUNK_B)]                       # [4, CHUNK_B]
        # Layer 1 on the MXU: [128,4] @ [4,CHUNK_B] -> [128,CHUNK_B].
        hc = jnp.dot(w1_ref[...], xc, preferred_element_type=jnp.float32)
        hc = jnp.maximum(hc + b1_ref[...], 0.0)                     # bias + ReLU (VPU)
        # Layer 2 also on the (otherwise idle) MXU: [1,128] @ [128,CHUNK_B].
        vc = jnp.dot(w2, hc, preferred_element_type=jnp.float32)    # [1, CHUNK_B]
        o_ref[:, pl.ds(start, CHUNK_B)] = (vc + b2).astype(o_ref.dtype)
        return carry

    lax.fori_loop(0, n_chunks, chunk, 0, unroll=True)


def value_net_pallas(x, w1, b1, w2, b2, *, tile_b=16384, x_feature_major=False):
    """Forward pass of ValueNet (PyTorch nn.Linear semantics).

    x : [B, 4] f32 (or [4, B] if x_feature_major=True)
    w1: [128, 4], b1: [128]   (self.hidden = nn.Linear(4, 128))
    w2: [1, 128], b2: [1]     (self.output = nn.Linear(128, 1))
    Returns [B, 1] f32  ==  output(relu(hidden(x))).
    """
    hidden = w1.shape[0]

    if x_feature_major:
        xt = x                           # already [4, B]: no wrapper transpose
        B = x.shape[1]
    else:
        B = x.shape[0]
        xt = x.T                         # single XLA transpose pass over x

    if B == 0:                           # degenerate batch: nothing to launch
        return jnp.zeros((0, 1), jnp.float32)
    if xt.dtype != jnp.float32:
        xt = xt.astype(jnp.float32)

    # Batch tiling.  tile_b is rounded to the chunk granularity; the batch is
    # padded only to the chunk granularity (not to tile_b), and the tile is
    # chosen so it divides the padded batch exactly.
    tile_b = max(CHUNK_B, (int(tile_b) // CHUNK_B) * CHUNK_B)
    b_aligned = _round_up(B, CHUNK_B)
    n_steps = _cdiv(b_aligned, tile_b)
    if b_aligned >= 2 * CHUNK_B:
        n_steps = max(n_steps, 2)        # >= 2 parallel grid steps for v7x's 2 TCs
    tile = _round_up(_cdiv(b_aligned, n_steps), CHUNK_B)
    b_pad = n_steps * tile
    if b_pad != B:
        xt = jnp.pad(xt, ((0, 0), (0, b_pad - B)))   # pad the dense [4,B] slab

    w1c = w1.astype(jnp.float32)                      # [128, 4]
    b1c = b1.reshape(hidden, 1).astype(jnp.float32)   # [128, 1]
    w2c = w2.reshape(1, hidden).astype(jnp.float32)   # [1, 128]
    b2c = b2.reshape(1, 1).astype(jnp.float32)        # [1, 1] -> SMEM scalar

    out = pl.pallas_call(
        _value_net_kernel,
        out_shape=jax.ShapeDtypeStruct((1, b_pad), jnp.float32),
        grid=(n_steps,),
        in_specs=[
            # x tiles stream through the grid; default double-buffering is
            # plenty (~32 B of input per batch element).
            pl.BlockSpec((ACTOR_INPUTS, tile), lambda i: (0, i)),
            # Weights / biases: same block every step -> stay VMEM-resident.
            pl.BlockSpec((hidden, ACTOR_INPUTS), lambda i: (0, 0)),
            pl.BlockSpec((hidden, 1), lambda i: (0, 0)),
            pl.BlockSpec((1, hidden), lambda i: (0, 0)),
            # b2 lives in SMEM: no padded VMEM block, no lane broadcast.
            pl.BlockSpec(memory_space=pltpu.MemorySpace.SMEM),
        ],
        out_specs=pl.BlockSpec((1, tile), lambda i: (0, i)),
        compiler_params=pltpu.CompilerParams(
            dimension_semantics=("parallel",),
        ),
    )(xt, w1c, b1c, w2c, b2c)

    return out[0, :B].reshape(B, 1)


def init_params(key, in_dim=ACTOR_INPUTS, hidden=HIDDEN_DIM_1):
    """torch.nn.Linear default init: U(-1/sqrt(fan_in), 1/sqrt(fan_in)),
    stored in native PyTorch layouts ([out, in] weights, [out] biases)."""
    k1, k2, k3, k4 = jax.random.split(key, 4)
    bound1 = 1.0 / math.sqrt(in_dim)
    bound2 = 1.0 / math.sqrt(hidden)
    w1 = jax.random.uniform(k1, (hidden, in_dim), jnp.float32, -bound1, bound1)
    b1 = jax.random.uniform(k2, (hidden,), jnp.float32, -bound1, bound1)
    w2 = jax.random.uniform(k3, (1, hidden), jnp.float32, -bound2, bound2)
    b2 = jax.random.uniform(k4, (1,), jnp.float32, -bound2, bound2)
    return w1, b1, w2, b2


def value_net_ref(x, w1, b1, w2, b2):
    h = jnp.maximum(x @ w1.T + b1, 0.0)
    return h @ w2.T + b2


if __name__ == "__main__":
    key = jax.random.PRNGKey(0)
    kp, kx1, kx2 = jax.random.split(key, 3)
    w1, b1, w2, b2 = init_params(kp)

    # Small batch: single grid step, single in-kernel chunk.
    batch = 8
    x = jax.random.normal(kx1, (batch, ACTOR_INPUTS), dtype=jnp.float32)
    out = jax.block_until_ready(value_net_pallas(x, w1, b1, w2, b2))
    ref = value_net_ref(x, w1, b1, w2, b2)
    assert out.shape == (batch, 1), out.shape
    assert jnp.allclose(out, ref, atol=1e-5, rtol=1e-5), (
        f"max abs err {float(jnp.max(jnp.abs(out - ref)))}"
    )

    # Ragged batch: multi-step grid, multi-chunk inner loop, bounded padding.
    batch2 = 1000
    x2 = jax.random.normal(kx2, (batch2, ACTOR_INPUTS), dtype=jnp.float32)
    out2 = jax.block_until_ready(
        value_net_pallas(x2, w1, b1, w2, b2, tile_b=512)
    )
    ref2 = value_net_ref(x2, w1, b1, w2, b2)
    assert out2.shape == (batch2, 1), out2.shape
    assert jnp.allclose(out2, ref2, atol=1e-5, rtol=1e-5), (
        f"max abs err {float(jnp.max(jnp.abs(out2 - ref2)))}"
    )

    # Feature-major producer path ([4, B] input, no wrapper transpose).
    out3 = jax.block_until_ready(
        value_net_pallas(x2.T, w1, b1, w2, b2, x_feature_major=True)
    )
    assert out3.shape == (batch2, 1), out3.shape
    assert jnp.allclose(out3, ref2, atol=1e-5, rtol=1e-5), (
        f"max abs err {float(jnp.max(jnp.abs(out3 - ref2)))}"
    )

    print("KERNEL_OK")
</pallas_src>

<mosaic_0001>
module attributes {stable_mosaic.version = 11 : i64} {
  func.func @_value_net_kernel(%arg0: i32, %arg1: memref<4x256xf32, #tpu.memory_space<vmem>>, %arg2: memref<128x4xf32, #tpu.memory_space<vmem>>, %arg3: memref<128x1xf32, #tpu.memory_space<vmem>>, %arg4: memref<1x128xf32, #tpu.memory_space<vmem>>, %arg5: memref<1x1xf32, #tpu.memory_space<smem>>, %arg6: memref<1x256xf32, #tpu.memory_space<vmem>>) attributes {dimension_semantics = [#tpu.dimension_semantics<parallel>], iteration_bounds = array<i64: 1>, scalar_prefetch = 0 : i64, scratch_operands = 0 : i64, tpu.core_type = #tpu.core_type<tc>, window_params = [{transform_indices = @transform_0, window_bounds = array<i64: 4, 256>}, {pipeline_mode = #tpu.pipeline_mode<synchronous>, transform_indices = @transform_1, window_bounds = array<i64: 128, 4>}, {pipeline_mode = #tpu.pipeline_mode<synchronous>, transform_indices = @transform_2, window_bounds = array<i64: 128, 1>}, {pipeline_mode = #tpu.pipeline_mode<synchronous>, transform_indices = @transform_3, window_bounds = array<i64: 1, 128>}, {transform_indices = @transform_4, window_bounds = array<i64: 1, 1>}, {transform_indices = @transform_5, window_bounds = array<i64: 1, 256>}]} {
    %c0 = arith.constant 0 : index
    %c0_0 = arith.constant 0 : index
    %0 = vector.load %arg4[%c0, %c0_0] : memref<1x128xf32, #tpu.memory_space<vmem>>, vector<1x128xf32>
    %c0_1 = arith.constant 0 : index
    %c0_2 = arith.constant 0 : index
    %1 = memref.load %arg5[%c0_1, %c0_2] : memref<1x1xf32, #tpu.memory_space<smem>>
    %c0_i32 = arith.constant 0 : i32
    %c256_i32 = arith.constant 256 : i32
    %2 = arith.muli %c0_i32, %c256_i32 : i32
    %3 = tpu.assume_multiple %2, 256 : i32
    %c0_3 = arith.constant 0 : index
    %4 = arith.index_cast %3 : i32 to index
    %5 = vector.load %arg1[%c0_3, %4] : memref<4x256xf32, #tpu.memory_space<vmem>>, vector<4x256xf32>
    %c0_4 = arith.constant 0 : index
    %c0_5 = arith.constant 0 : index
    %6 = vector.load %arg2[%c0_4, %c0_5] : memref<128x4xf32, #tpu.memory_space<vmem>>, vector<128x4xf32>
    %cst = arith.constant dense<0.000000e+00> : vector<128x256xf32>
    %7 = tpu.matmul %6, %5, %cst {dimension_numbers = #tpu.dot_dimension_numbers<[1], [0], [0], [1], [0, 0, 1, 1], [], []>} : vector<128x4xf32>, vector<4x256xf32>, vector<128x256xf32> -> vector<128x256xf32>
    %c0_6 = arith.constant 0 : index
    %c0_7 = arith.constant 0 : index
    %8 = vector.load %arg3[%c0_6, %c0_7] : memref<128x1xf32, #tpu.memory_space<vmem>>, vector<128x1xf32>
    %9 = vector.broadcast %8 : vector<128x1xf32> to vector<128x256xf32>
    %10 = arith.addf %7, %9 : vector<128x256xf32>
    %cst_8 = arith.constant 0.000000e+00 : f32
    %11 = vector.broadcast %cst_8 : f32 to vector<128x256xf32>
    %12 = arith.maximumf %10, %11 : vector<128x256xf32>
    %cst_9 = arith.constant dense<0.000000e+00> : vector<1x256xf32>
    %13 = tpu.matmul %0, %12, %cst_9 {dimension_numbers = #tpu.dot_dimension_numbers<[1], [0], [0], [1], [0, 0, 1, 1], [], []>} : vector<1x128xf32>, vector<128x256xf32>, vector<1x256xf32> -> vector<1x256xf32>
    %14 = vector.broadcast %1 : f32 to vector<1x256xf32>
    %15 = arith.addf %13, %14 : vector<1x256xf32>
    %c0_10 = arith.constant 0 : index
    %16 = arith.index_cast %3 : i32 to index
    %17 = vector.load %arg6[%c0_10, %16] : memref<1x256xf32, #tpu.memory_space<vmem>>, vector<1x256xf32>
    tpu.vector_store %arg6[%c0_10, %16], %15 {strides = array<i32>} : memref<1x256xf32, #tpu.memory_space<vmem>>, vector<1x256xf32>,
    %c1_i32 = arith.constant 1 : i32
    return
  }
  func.func @transform_0(%arg0: i32) -> (i32, i32) {
    %c0_i32 = arith.constant 0 : i32
    %c0_i32_0 = arith.constant 0 : i32
    return %c0_i32, %arg0 : i32, i32
  }
  func.func @transform_1(%arg0: i32) -> (i32, i32) {
    %c0_i32 = arith.constant 0 : i32
    %c0_i32_0 = arith.constant 0 : i32
    %c0_i32_1 = arith.constant 0 : i32
    return %c0_i32, %c0_i32_0 : i32, i32
  }
  func.func @transform_2(%arg0: i32) -> (i32, i32) {
    %c0_i32 = arith.constant 0 : i32
    %c0_i32_0 = arith.constant 0 : i32
    %c0_i32_1 = arith.constant 0 : i32
    return %c0_i32, %c0_i32_0 : i32, i32
  }
  func.func @transform_3(%arg0: i32) -> (i32, i32) {
    %c0_i32 = arith.constant 0 : i32
    %c0_i32_0 = arith.constant 0 : i32
    %c0_i32_1 = arith.constant 0 : i32
    return %c0_i32, %c0_i32_0 : i32, i32
  }
  func.func @transform_4(%arg0: i32) -> (i32, i32) {
    %c0_i32 = arith.constant 0 : i32
    %c0_i32_0 = arith.constant 0 : i32
    %c0_i32_1 = arith.constant 0 : i32
    return %c0_i32, %c0_i32_0 : i32, i32
  }
  func.func @transform_5(%arg0: i32) -> (i32, i32) {
    %c0_i32 = arith.constant 0 : i32
    %c0_i32_0 = arith.constant 0 : i32
    return %c0_i32, %arg0 : i32, i32
  }
}

</mosaic_0001>

<bundles_post_ra>
// kernel: tpu_custom_call.1
= control target key start
LH: loop header
LB: loop body
LE: loop exit
PB: predicated region body
PF: predicated region fallthrough
CT: control target
= control target key end

     0   :  { %vm188_vm0 = vcmask 1043456   ;;  %v542_v2 = vmov 0.0   ;;  %vm139_vm1 = vcmask 31744   ;;  %v543_v4 = vmov 0   ;;  %s765_s0 = inlined_call_operand.vmem [shape: f32[4,256], index: 0, kind: input, shape index: {}]   ;;  %s766_s1 = inlined_call_operand.vmem [shape: f32[128,4], index: 1, kind: input, shape index: {}]   ;;  %s767_s2 = inlined_call_operand.vmem [shape: f32[128,1], index: 2, kind: input, shape index: {}]   ;;  %s768_s3 = inlined_call_operand.vmem [shape: f32[1,128], index: 3, kind: input, shape index: {}]   ;;  %s769_s4 = inlined_call_operand.<no memory space> [shape: f32[1,1], index: 4, kind: input, shape index: {}]   ;;  %s770_s5 = inlined_call_operand.hbm [shape: f32[1,256], index: 5, kind: output, shape index: {}]  }
   0x1   :  { %v24_v0 = vld [vmem:[%s765_s0] sm:$0xff]  ;;  %257 = vmatprep.mubr.f32.mxu0 %v542_v2  ;;  %451 = vmatprep.mubr.f32.mxu1 %v542_v2  ;;  %v54_v5 = vld [vmem:[%s767_s2 + $0x68] sm:$0xff]  ;;  %v56_v6 = vld [vmem:[%s767_s2 + $0x78] sm:$0xff] }
   0x2   :  { %v138_v1 = vcombine.high %v24_v0, %v24_v0  ;;  %v25_v3 = vld [vmem:[%s766_s1] sm:$0xff]  ;;  %518 = vset.pattern.permute.xlu1 %v543_v4  ;;  %517 = vset.pattern.permute.xlu0 %v543_v4  ;;  %v26_v7 = vld [vmem:[%s766_s1 + $0x8] sm:$0xff]  ;;  %v55_v9 = vld [vmem:[%s767_s2 + $0x70] sm:$0xff] }
   0x3   :  { %124 = vperm.xlu1 %518, %v54_v5   ;;  %134 = vperm.xlu0 %517, %v56_v6   ;;  %v53_v8 = vld [vmem:[%s767_s2 + $0x60] sm:$0xff]  ;;  %v27_v10 = vld [vmem:[%s766_s1 + $0x10] sm:$0xff]  ;;  %v52_v12 = vld [vmem:[%s767_s2 + $0x58] sm:$0xff] }
   0x4   :  { %495 = vmatprep.subr.msk.mxu0 %vm188_vm0, %v138_v1  ;;  %v51_v11 = vld [vmem:[%s767_s2 + $0x50] sm:$0xff] }
   0x5   :  { %496 = vmatpush1.msk.msra.mxu0 %vm188_vm0, %v24_v0 }
   0x6   :  { %497 = vmatmul.mubr.msk.f32.vlgmr.msra.gmra.mxu0 %vm139_vm1, %v25_v3 }
   0x7   :  { %263 = vmatprep.mubr.f32.mxu0 %v542_v2  ;;  %119 = vperm.xlu1 %518, %v53_v8  }
   0x8   :  { %129 = vperm.xlu0 %517, %v55_v9  }
   0xa   :  { %498 = vmatmul.mubr.msk.f32.gmra.mxu0 %vm139_vm1, %v26_v7 }
   0xb   :  { %269 = vmatprep.mubr.f32.mxu0 %v542_v2 }
   0xc   :  { %11 = vsyncpa [#allocation4], 0  ;;  %109 = vperm.xlu1 %518, %v51_v11   ;;  %v28_v13 = vld [vmem:[%s766_s1 + $0x18] sm:$0xff]  ;;  %114 = vperm.xlu0 %517, %v52_v12   ;;  %v49_v14 = vld [vmem:[%s767_s2 + $0x40] sm:$0xff]  ;;  %s545_s8 = smov [#allocation3]  }
   0xd   :  { %v50_v15 = vld [vmem:[%s767_s2 + $0x48] sm:$0xff]  ;;  %v29_v16 = vld [vmem:[%s766_s1 + $0x20] sm:$0xff]  ;;  %v47_v17 = vld [vmem:[%s767_s2 + $0x30] sm:$0xff] }
   0xe   :  { %499 = vmatmul.mubr.msk.f32.gmra.mxu0 %vm139_vm1, %v27_v10  ;;  %v48_v18 = vld [vmem:[%s767_s2 + $0x38] sm:$0xff]  ;;  %v30_v19 = vld [vmem:[%s766_s1 + $0x28] sm:$0xff]  ;;  %v45_v20 = vld [vmem:[%s767_s2 + $0x20] sm:$0xff] }
   0xf   :  { %275 = vmatprep.mubr.f32.mxu0 %v542_v2  ;;  %v46_v21 = vld [vmem:[%s767_s2 + $0x28] sm:$0xff]  ;;  %v31_v22 = vld [vmem:[%s766_s1 + $0x30] sm:$0xff]  ;;  %v44_v24 = vld [vmem:[%s767_s2 + $0x18] sm:$0xff] }
  0x10   :  { %99 = vperm.xlu1 %518, %v49_v14   ;;  %104 = vperm.xlu0 %517, %v50_v15   ;;  %v43_v23 = vld [vmem:[%s767_s2 + $0x10] sm:$0xff]  ;;  %v32_v25 = vld [vmem:[%s766_s1 + $0x38] sm:$0xff]  ;;  %v41_v26 = vld [vmem:[%s767_s2] sm:$0xff] }
  0x11   :  { %v42_v27 = vld [vmem:[%s767_s2 + $0x8] sm:$0xff]  ;;  %v33_v28 = vld [vmem:[%s766_s1 + $0x40] sm:$0xff]  ;;  %v35_v30 = vld [vmem:[%s766_s1 + $0x50] sm:$0xff] }
  0x12   :  { %500 = vmatmul.mubr.msk.f32.gmra.mxu0 %vm139_vm1, %v28_v13  ;;  %v34_v29 = vld [vmem:[%s766_s1 + $0x48] sm:$0xff]  ;;  %v36_v31 = vld [vmem:[%s766_s1 + $0x58] sm:$0xff]  ;;  %v37_v32 = vld [vmem:[%s766_s1 + $0x60] sm:$0xff] }
  0x13   :  { %281 = vmatprep.mubr.f32.mxu0 %v542_v2  ;;  %v38_v33 = vld [vmem:[%s766_s1 + $0x68] sm:$0xff]  ;;  %v39_v34 = vld [vmem:[%s766_s1 + $0x70] sm:$0xff]  ;;  %v40_v35 = vld [vmem:[%s766_s1 + $0x78] sm:$0xff] }
  0x14   :  { %89 = vperm.xlu1 %518, %v47_v17   ;;  %94 = vperm.xlu0 %517, %v48_v18  }
  0x16   :  { %501 = vmatmul.mubr.msk.f32.gmra.mxu0 %vm139_vm1, %v29_v16 }
  0x17   :  { %287 = vmatprep.mubr.f32.mxu0 %v542_v2 }
  0x18   :  { %79 = vperm.xlu1 %518, %v45_v20   ;;  %84 = vperm.xlu0 %517, %v46_v21  }
  0x1a   :  { %502 = vmatmul.mubr.msk.f32.gmra.mxu0 %vm139_vm1, %v30_v19 }
  0x1b   :  { %293 = vmatprep.mubr.f32.mxu0 %v542_v2 }
  0x1c   :  { %69 = vperm.xlu1 %518, %v43_v23   ;;  %74 = vperm.xlu0 %517, %v44_v24  }
  0x1e   :  { %503 = vmatmul.mubr.msk.f32.gmra.mxu0 %vm139_vm1, %v31_v22 }
  0x1f   :  { %299 = vmatprep.mubr.f32.mxu0 %v542_v2 }
  0x20   :  { %59 = vperm.xlu1 %518, %v41_v26   ;;  %64 = vperm.xlu0 %517, %v42_v27  }
  0x22   :  { %504 = vmatmul.mubr.msk.f32.gmra.mxu0 %vm139_vm1, %v32_v25 }
  0x23   :  { %305 = vmatprep.mubr.f32.mxu0 %v542_v2 }
  0x26   :  { %505 = vmatmul.mubr.msk.f32.gmra.mxu0 %vm139_vm1, %v33_v28 }
  0x27   :  { %311 = vmatprep.mubr.f32.mxu0 %v542_v2 }
  0x2a   :  { %506 = vmatmul.mubr.msk.f32.gmra.mxu0 %vm139_vm1, %v34_v29 }
  0x2b   :  { %317 = vmatprep.mubr.f32.mxu0 %v542_v2 }
  0x2e   :  { %507 = vmatmul.mubr.msk.f32.gmra.mxu0 %vm139_vm1, %v35_v30 }
  0x2f   :  { %323 = vmatprep.mubr.f32.mxu0 %v542_v2 }
  0x32   :  { %508 = vmatmul.mubr.msk.f32.gmra.mxu0 %vm139_vm1, %v36_v31 }
  0x33   :  { %329 = vmatprep.mubr.f32.mxu0 %v542_v2 }
  0x36   :  { %509 = vmatmul.mubr.msk.f32.gmra.mxu0 %vm139_vm1, %v37_v32 }
  0x37   :  { %335 = vmatprep.mubr.f32.mxu0 %v542_v2 }
  0x3a   :  { %510 = vmatmul.mubr.msk.f32.gmra.mxu0 %vm139_vm1, %v38_v33 }
  0x3b   :  { %341 = vmatprep.mubr.f32.mxu0 %v542_v2 }
  0x3e   :  { %511 = vmatmul.mubr.msk.f32.gmra.mxu0 %vm139_vm1, %v39_v34 }
  0x3f   :  { %347 = vmatprep.mubr.f32.mxu0 %v542_v2 }
  0x42   :  { %512 = vmatmul.mubr.msk.f32.gmra.mxu0 %vm139_vm1, %v40_v35 }
  0x7e   :  { %v135_v59 = vpop.permute.xlu0 %134  ;;  %v125_v61 = vpop.permute.xlu1 %124 }
  0x82   :  { %v120_v2 = vpop.permute.xlu1 %119 }
  0x83   :  { %v130_v0 = vpop.permute.xlu0 %129 }
  0x87   :  { %v115_v5 = vpop.permute.xlu0 %114  ;;  %v110_v7 = vpop.permute.xlu1 %109 }
  0x8b   :  { %v105_v11 = vpop.permute.xlu0 %104  ;;  %v100_v15 = vpop.permute.xlu1 %99 }
  0x8f   :  { %v95_v24 = vpop.permute.xlu0 %94  ;;  %v90_v29 = vpop.permute.xlu1 %89 }
  0xc6   :  { %v708_v36 = vpop.f32.mrf.mxu0 }
  0xc8   :  { %v710_v37 = vpop.f32.mrf.mxu0 }
  0xca   :  { %v712_v38 = vpop.f32.mrf.mxu0 }
  0xcc   :  { %v714_v39 = vpop.f32.mrf.mxu0 }
  0xce   :  { %v716_v40 = vpop.f32.mrf.mxu0 }
  0xd0   :  { %v718_v41 = vpop.f32.mrf.mxu0 }
  0xd2   :  { %v720_v42 = vpop.f32.mrf.mxu0 }
  0xd4   :  { %v722_v43 = vpop.f32.mrf.mxu0 }
  0xd6   :  { %v724_v44 = vpop.f32.mrf.mxu0 }
  0xd8   :  { %v726_v45 = vpop.f32.mrf.mxu0 }
  0xda   :  { %v728_v46 = vpop.f32.mrf.mxu0 }
  0xdc   :  { %v730_v47 = vpop.f32.mrf.mxu0 }
  0xde   :  { %v732_v48 = vpop.f32.mrf.mxu0 }
  0xe0   :  { %v734_v49 = vpop.f32.mrf.mxu0 }
  0xe2   :  { %v736_v50 = vpop.f32.mrf.mxu0 }
  0xe4   :  { %v738_v51 = vpop.f32.mrf.mxu0 }
  0xe6   :  { %v307_v52 = vpop.f32.mrf.mxu0 }
  0xe8   :  { %v309_v53 = vpop.f32.mrf.mxu0 }
  0xea   :  { %v313_v54 = vpop.f32.mrf.mxu0 }
  0xec   :  { %v315_v55 = vpop.f32.mrf.mxu0 }
  0xed   :  { %v316_v34 = vadd.f32 %v315_v55, %v105_v11 }
  0xee   :  { %v319_v56 = vpop.f32.mrf.mxu0 }
  0xef   :  { %v320_v32 = vadd.f32 %v319_v56, %v110_v7  ;;  %v302_v56 = vadd.f32 %v736_v50, %v95_v24 }
  0xf0   :  { %v321_v57 = vpop.f32.mrf.mxu0 }
  0xf1   :  { %v322_v30 = vadd.f32 %v321_v57, %v110_v7  ;;  %v304_v57 = vadd.f32 %v738_v51, %v95_v24  ;;  %v368_v7 = vmax.f32 %v302_v56, 0.0 }
  0xf2   :  { %v325_v58 = vpop.f32.mrf.mxu0 }
  0xf3   :  { %v326_v27 = vadd.f32 %v325_v58, %v115_v5  ;;  %v308_v58 = vadd.f32 %v307_v52, %v100_v15 }
  0xf4   :  { %v327_v60 = vpop.f32.mrf.mxu0 }
  0xf5   :  { %v328_v25 = vadd.f32 %v327_v60, %v115_v5  ;;  %v310_v60 = vadd.f32 %v309_v53, %v100_v15  ;;  %v296_v53 = vadd.f32 %v732_v48, %v90_v29 }
  0xf6   :  { %v331_v62 = vpop.f32.mrf.mxu0 }
  0xf7   :  { %v332_v22 = vadd.f32 %v331_v62, %v120_v2  ;;  %v377_v35 = vmax.f32 %v328_v25, 0.0  ;;  %v85_v62 = vpop.permute.xlu0 %84 }
  0xf8   :  { %v333_v63 = vpop.f32.mrf.mxu0  ;;  %v292_v5 = vadd.f32 %v730_v47, %v85_v62  ;;  %v290_v51 = vadd.f32 %v728_v46, %v85_v62 }
  0xf9   :  { %v334_v20 = vadd.f32 %v333_v63, %v120_v2  ;;  %v378_v33 = vmax.f32 %v332_v22, 0.0  ;;  %v375_v63 = vmax.f32 %v322_v30, 0.0  ;;  %v373_v2 = vmax.f32 %v316_v34, 0.0 }
  0xfa   :  { %v337_v1 = vpop.f32.mrf.mxu0 }
  0xfb   :  { %v338_v18 = vadd.f32 %v337_v1, %v125_v61  ;;  %v379_v31 = vmax.f32 %v334_v20, 0.0  ;;  %v80_v1 = vpop.permute.xlu1 %79  ;;  %v75_v52 = vpop.permute.xlu0 %74 }
  0xfc   :  { %v339_v3 = vpop.f32.mrf.mxu0  ;;  %v280_v48 = vadd.f32 %v722_v43, %v75_v52  ;;  %v278_v47 = vadd.f32 %v720_v42, %v75_v52 }
  0xfd   :  { %v340_v16 = vadd.f32 %v339_v3, %v125_v61  ;;  %v380_v28 = vmax.f32 %v338_v18, 0.0  ;;  %v376_v61 = vmax.f32 %v326_v27, 0.0  ;;  %v371_v3 = vmax.f32 %v310_v60, 0.0 }
  0xfe   :  { %v343_v4 = vpop.f32.mrf.mxu0  ;;  %v360_v18 = vmax.f32 %v278_v47, 0.0 }
  0xff   :  { %v344_v14 = vadd.f32 %v343_v4, %v130_v0  ;;  %v381_v26 = vmax.f32 %v340_v16, 0.0  ;;  %v370_v4 = vmax.f32 %v308_v58, 0.0  ;;  %v70_v50 = vpop.permute.xlu1 %69  ;;  %v65_v46 = vpop.permute.xlu0 %64 }
 0x100   :  { %v345_v6 = vpop.f32.mrf.mxu0  ;;  %v268_v16 = vadd.f32 %v714_v39, %v65_v46  ;;  %v266_v43 = vadd.f32 %v712_v38, %v65_v46  ;;  %v22_v38 = vld [vmem:[%s768_s3] sm:$0x1]  ;;  %s487_s3 = sshll.u32 %s545_s8, 4  ;;  %s488_s3 = int_to_ptr.vmem [resolvable:$true] %s487_s3 }
 0x101   :  { %v346_v12 = vadd.f32 %v345_v6, %v130_v0  ;;  %v382_v23 = vmax.f32 %v344_v14, 0.0  ;;  %v374_v0 = vmax.f32 %v320_v32, 0.0  ;;  %v369_v6 = vmax.f32 %v304_v57, 0.0  ;;  %s520_s9 = scalar_lea.vmem %s488_s3, 32  ;;  %p525_p1 = scmp.lt.s32.totalorder %s488_s3, %s488_s3 }
 0x102   :  { %v349_v8 = vpop.f32.mrf.mxu0  ;;  %p521_p0 = scmp.ne.s32.totalorder %s488_s3, %s520_s9  ;;  %p526_p2 = scmp.lt.s32.totalorder %s520_s9, %s520_s9 }
 0x103   :  { %v350_v9 = vadd.f32 %v349_v8, %v135_v59  ;;  %v383_v21 = vmax.f32 %v346_v12, 0.0  ;;  %v286_v8 = vadd.f32 %v726_v45, %v80_v1  ;;  %v364_v12 = vmax.f32 %v290_v51, 0.0 }
 0x104   :  { %v351_v10 = vpop.f32.mrf.mxu0  ;;  %v272_v45 = vadd.f32 %v716_v40, %v70_v50  ;;  %v357_v40 = vmax.f32 %v268_v16, 0.0  ;;  %p527_p3 = por %p526_p2, %p525_p1 }
 0x105   :  { %v352_v13 = vadd.f32 %v351_v10, %v135_v59  ;;  %v384_v19 = vmax.f32 %v350_v9, 0.0  ;;  %v314_v59 = vadd.f32 %v313_v54, %v105_v11  ;;  %v298_v54 = vadd.f32 %v734_v49, %v90_v29 }
 0x106   :  { %v284_v49 = vadd.f32 %v724_v44, %v80_v1  ;;  %v366_v10 = vmax.f32 %v296_v53, 0.0  ;;  %v365_v11 = vmax.f32 %v292_v5, 0.0  ;;  %v363_v14 = vmax.f32 %v286_v8, 0.0  ;;  %v60_v44 = vpop.permute.xlu1 %59  ;;  %p528_p4 = pnand %p527_p3, %p521_p0 }
 0x107   :  { %v385_v17 = vmax.f32 %v352_v13, 0.0  ;;  %v372_v55 = vmax.f32 %v314_v59, 0.0  ;;  %v367_v9 = vmax.f32 %v298_v54, 0.0  ;;  %v274_v13 = vadd.f32 %v718_v41, %v70_v50 }
 0x108   :  { %v362_v15 = vmax.f32 %v284_v49, 0.0  ;;  %v262_v42 = vadd.f32 %v710_v37, %v60_v44  ;;  %v260_v41 = vadd.f32 %v708_v36, %v60_v44  ;;  %v358_v20 = vmax.f32 %v272_v45, 0.0 }
 0x109   :  { %387 = vmatprep.subr.mxu1 %v385_v17  ;;  %v361_v17 = vmax.f32 %v280_v48, 0.0  ;;  %v544_v37 = vmov 1966171168   ;;  %v464_v36 = vlaneseq }
 0x10a   :  { %388 = vmatpush1.msra.mxu1 %v384_v19  ;;  %v359_v19 = vmax.f32 %v274_v13, 0.0  ;;  %v355_v22 = vmax.f32 %v262_v42, 0.0  ;;  %v354_v39 = vmax.f32 %v260_v41, 0.0 }
 0x10b   :  { %389 = vmatprep.subr.mxu1 %v383_v21  ;;  %v356_v21 = vmax.f32 %v266_v43, 0.0  ;;  %v465_v25 = vshrl.u32 %v464_v36, 7  ;;  %vm478_vm2 = vcmp.lt.s32.totalorder %v464_v36, 256 }
 0x10c   :  { %390 = vmatpush1.msra.mxu1 %v382_v23  ;;  %v462_v23 = vunpack.c.l.s4 %v544_v37 }
 0x10d   :  { %391 = vmatprep.subr.mxu1 %v381_v26  ;;  %v386_v26 = vstv %s769_s4 }
 0x10e   :  { %392 = vmatpush1.msra.mxu1 %v380_v28  ;;  %v463_v24 = vunpack.c.0.s8 %v462_v23 }
 0x10f   :  { %393 = vmatprep.subr.mxu1 %v379_v31 }
 0x110   :  { %394 = vmatpush1.msra.mxu1 %v378_v33  ;;  %v466_v31 = vsub.s32 %v463_v24, %v465_v25 }
 0x111   :  { %395 = vmatprep.subr.mxu1 %v377_v35 }
 0x112   :  { %396 = vmatpush1.msra.mxu1 %v376_v61 }
 0x113   :  { %397 = vmatprep.subr.mxu1 %v375_v63 }
 0x114   :  { %398 = vmatpush1.msra.mxu1 %v374_v0 }
 0x115   :  { %399 = vmatprep.subr.mxu1 %v373_v2 }
 0x116   :  { %400 = vmatpush1.msra.mxu1 %v372_v55 }
 0x117   :  { %401 = vmatprep.subr.mxu1 %v371_v3 }
 0x118   :  { %402 = vmatpush1.msra.mxu1 %v370_v4 }
 0x119   :  { %403 = vmatprep.subr.mxu1 %v369_v6 }
 0x11a   :  { %404 = vmatpush1.msra.mxu1 %v368_v7 }
 0x11b   :  { %405 = vmatprep.subr.mxu1 %v367_v9 }
 0x11c   :  { %406 = vmatpush1.msra.mxu1 %v366_v10 }
 0x11d   :  { %407 = vmatprep.subr.mxu1 %v365_v11 }
 0x11e   :  { %408 = vmatpush1.msra.mxu1 %v364_v12 }
 0x11f   :  { %409 = vmatprep.subr.mxu1 %v363_v14 }
 0x120   :  { %410 = vmatpush1.msra.mxu1 %v362_v15 }
 0x121   :  { %411 = vmatprep.subr.mxu1 %v361_v17 }
 0x122   :  { %412 = vmatpush1.msra.mxu1 %v360_v18 }
 0x123   :  { %413 = vmatprep.subr.mxu1 %v359_v19 }
 0x124   :  { %414 = vmatpush1.msra.mxu1 %v358_v20 }
 0x125   :  { %415 = vmatprep.subr.mxu1 %v357_v40 }
 0x126   :  { %416 = vmatpush1.msra.mxu1 %v356_v21 }
 0x127   :  { %417 = vmatprep.subr.mxu1 %v355_v22 }
 0x128   :  { %418 = vmatpush1.msra.mxu1 %v354_v39 }
 0x129   :  { %452 = vmatmul.mubr.f32.vlgmr.msra.gmra.mxu1 %v22_v38 }
 0x1e9   :  { %v453_v27 = vpop.f32.mrf.mxu1 }
 0x1ea   :  { %v454_v29 = vadd.f32 %v453_v27, %v386_v26 }
 0x1eb   :  { %v455_v28 = vpop.f32.mrf.mxu1 }
 0x1ec   :  { %v456_v30 = vadd.f32 %v455_v28, %v386_v26 }
 0x1ee   :  { %v460_v32 = vcombine.low %v454_v29, %v456_v30 }
 0x1f0   :  { %v467_v33 = vrot.slane %v460_v32, %v466_v31 }
 0x1f2   :  { %v474_v34 = vrot.slane %v467_v33, %v466_v31 }
 0x1f4   :  { %480 = vst.msk [vmem:[#allocation3] sm:$0x3] %vm478_vm2, %v474_v34 }
 0x1f5   :  { %531 = shalt.err (!%p528_p4)
}
 0x1f6   :  { %490 = dma.vmem_to_hbm [thread:$0]  %s488_s3, 32, %s770_s5, [#allocation4]  }
 0x1f7   :  { %540 = dma.done.wait [#allocation4], 32  }
 0x1f8   :  { %541 = vsyncadd [#allocation4], 4294967264 }
 0x1f9   :  { %494 = vsyncpa [#allocation4], 1 }

</bundles_post_ra>
